<compile_context>
chip_gen: v6e
topology: v6e:2x2x1
jax: 0.10.0
libtpu: 0.0.40
codegen_flags: <defaults>
</compile_context>

<pallas_src>
import functools

import jax
import jax.numpy as jnp
from jax import lax
from jax.experimental import pallas as pl
from jax.experimental.pallas import tpu as pltpu


def _round_up(x: int, m: int) -> int:
    return ((x + m - 1) // m) * m


def _ce_ls_kernel(x_ref, t_ref, out_ref, *, n_valid, num_classes, epsilon,
                  batch_tile):
    # x_ref : [bb, C]  logits tile (native dtype; batch on sublanes, classes on lanes)
    # t_ref : [bb, 1]  int32 target labels for this tile
    # out_ref: [1, 1]  scalar loss accumulator (resident across the grid)
    i = pl.program_id(0)

    @pl.when(i == 0)
    def _():
        out_ref[...] = jnp.zeros_like(out_ref)

    x = x_ref[...].astype(jnp.float32)                       # [bb, C]
    t = t_ref[...]                                           # [bb, 1] int32
    bb, C = x.shape

    # Row validity for the (possibly partial) last tile — no wrapper padding.
    row = lax.broadcasted_iota(jnp.int32, (bb, 1), 0) + i * batch_tile
    row_valid = row < n_valid                                # [bb, 1] bool

    # Zero garbage rows BEFORE any exp/log so they cannot produce inf/NaN.
    x = jnp.where(row_valid, x, 0.0)                         # [bb, C]

    # Numerically stable logsumexp over the class (lane) axis.
    m = jnp.max(x, axis=1, keepdims=True)                    # [bb, 1]
    shifted = x - m
    sum_exp = jnp.sum(jnp.exp(shifted), axis=1, keepdims=True)
    lse = m + jnp.log(sum_exp)                               # [bb, 1]

    # Target logit via lane-iota compare (no HBM one-hot, no gather).
    col = lax.broadcasted_iota(jnp.int32, (bb, C), 1)
    x_t = jnp.sum(jnp.where(col == t, x, 0.0), axis=1, keepdims=True)  # [bb,1]
    sum_x = jnp.sum(x, axis=1, keepdims=True)                # [bb, 1]

    # Label-smoothing decomposition (all per-row [bb,1] arithmetic):
    #   loss_row = (1-eps)*(lse - x_t) + (eps/C)*(C*lse - sum_x)
    loss_row = ((1.0 - epsilon) * (lse - x_t)
                + (epsilon / num_classes) * (num_classes * lse - sum_x))
    loss_row = jnp.where(row_valid, loss_row, 0.0)

    # Accumulate the raw sum; scale by 1/B once at the end.
    out_ref[...] += jnp.sum(loss_row, axis=0, keepdims=True)

    @pl.when(i == pl.num_programs(0) - 1)
    def _():
        out_ref[...] *= (1.0 / n_valid)


def cross_entropy_ls(inputs: jax.Array, targets: jax.Array, *,
                     epsilon: float = 0.1, num_classes: int | None = None,
                     batch_tile: int = 512,
                     vmem_budget_bytes: int = 16 * 1024 * 1024) -> jax.Array:
    """inputs: [B, C] logits (bf16/f32), targets: [B] int labels -> scalar f32 loss."""
    B, C = inputs.shape
    if num_classes is None:
        num_classes = C
    assert num_classes == C, "num_classes must equal the class dimension of inputs"

    itemsize = jnp.dtype(inputs.dtype).itemsize

    # VMEM-budgeted batch tile: double-buffered logits tile is 2*bb*C*itemsize.
    bb_budget = (vmem_budget_bytes // (2 * C * itemsize)) // 8 * 8
    bb_budget = max(8, bb_budget)
    bb = max(8, min(batch_tile, _round_up(B, 8), bb_budget))
    grid = pl.cdiv(B, bb)

    t = targets.astype(jnp.int32).reshape(B, 1)
    # Logits are passed in their native dtype; the f32 cast happens in-kernel.

    kernel = functools.partial(
        _ce_ls_kernel, n_valid=B, num_classes=num_classes,
        epsilon=float(epsilon), batch_tile=bb)

    logits_tile_bytes = bb * C * itemsize
    vmem_limit = int(min(max(2 * logits_tile_bytes + (2 << 20), 32 << 20),
                         96 << 20))

    cost = pl.CostEstimate(
        flops=6 * B * C,
        transcendentals=B * C,
        bytes_accessed=B * C * itemsize + B * 4 + 4)

    out = pl.pallas_call(
        kernel,
        out_shape=jax.ShapeDtypeStruct((1, 1), jnp.float32),
        grid_spec=pltpu.PrefetchScalarGridSpec(
            num_scalar_prefetch=0,
            grid=(grid,),
            in_specs=[
                pl.BlockSpec((bb, C), lambda i: (i, 0)),   # logits tile
                pl.BlockSpec((bb, 1), lambda i: (i, 0)),   # targets tile
            ],
            out_specs=pl.BlockSpec((1, 1), lambda i: (0, 0)),
        ),
        compiler_params=pltpu.CompilerParams(
            # single grid axis is a reduction into the scalar output
            dimension_semantics=("arbitrary",),
            vmem_limit_bytes=vmem_limit),
        cost_estimate=cost,
    )(inputs, t)
    return out[0, 0]


def _reference(inputs, targets, num_classes, epsilon):
    log_probs = jax.nn.log_softmax(inputs.astype(jnp.float32), axis=1)
    onehot = jax.nn.one_hot(targets, num_classes, dtype=jnp.float32)
    smoothed = (1.0 - epsilon) * onehot + epsilon / num_classes
    return jnp.sum(jnp.mean(-smoothed * log_probs, axis=0))


if __name__ == "__main__":
    epsilon = 0.1

    key = jax.random.PRNGKey(0)
    k_x1, k_t1, k_x2, k_t2, k_x3, k_t3 = jax.random.split(key, 6)

    # Case 1: batch divisible by the sublane granularity, f32 logits.
    B1, C1 = 16, 10
    x1 = jax.random.normal(k_x1, (B1, C1), dtype=jnp.float32)
    t1 = jax.random.randint(k_t1, (B1,), 0, C1, dtype=jnp.int32)
    loss1 = jax.block_until_ready(cross_entropy_ls(x1, t1, epsilon=epsilon,
                                                   num_classes=C1))
    ref1 = _reference(x1, t1, C1, epsilon)
    assert jnp.allclose(loss1, ref1, atol=1e-5, rtol=1e-5), (loss1, ref1)

    # Case 2: ragged batch (exercises the partial-tile in-kernel mask path).
    B2, C2 = 13, 7
    x2 = jax.random.normal(k_x2, (B2, C2), dtype=jnp.float32)
    t2 = jax.random.randint(k_t2, (B2,), 0, C2, dtype=jnp.int32)
    loss2 = jax.block_until_ready(cross_entropy_ls(x2, t2, epsilon=epsilon,
                                                   num_classes=C2))
    ref2 = _reference(x2, t2, C2, epsilon)
    assert jnp.allclose(loss2, ref2, atol=1e-5, rtol=1e-5), (loss2, ref2)

    # Case 3: bf16 logits fed in their native dtype (half the HBM traffic).
    B3, C3 = 24, 32
    x3 = jax.random.normal(k_x3, (B3, C3), dtype=jnp.float32).astype(jnp.bfloat16)
    t3 = jax.random.randint(k_t3, (B3,), 0, C3, dtype=jnp.int32)
    loss3 = jax.block_until_ready(cross_entropy_ls(x3, t3, epsilon=epsilon,
                                                   num_classes=C3))
    ref3 = _reference(x3, t3, C3, epsilon)   # reference upcasts the same bf16 values
    assert jnp.allclose(loss3, ref3, atol=1e-4, rtol=1e-4), (loss3, ref3)

    print("KERNEL_OK")
</pallas_src>

<mosaic_0001>
module attributes {stable_mosaic.version = 11 : i64} {
  func.func @_ce_ls_kernel(%arg0: i32, %arg1: memref<16x10xf32, #tpu.memory_space<vmem>>, %arg2: memref<16x1xi32, #tpu.memory_space<vmem>>, %arg3: memref<1x1xf32, #tpu.memory_space<vmem>>) attributes {dimension_semantics = [#tpu.dimension_semantics<arbitrary>], iteration_bounds = array<i64: 1>, scalar_prefetch = 0 : i64, scratch_operands = 0 : i64, tpu.core_type = #tpu.core_type<tc>, window_params = [{transform_indices = @transform_0, window_bounds = array<i64: 16, 10>}, {transform_indices = @transform_1, window_bounds = array<i64: 16, 1>}, {pipeline_mode = #tpu.pipeline_mode<synchronous>, transform_indices = @transform_2, window_bounds = array<i64: 1, 1>}]} {
    %c0_i32 = arith.constant 0 : i32
    %0 = arith.cmpi eq, %arg0, %c0_i32 : i32
    %1 = arith.extui %0 : i1 to i32
    %c0_i32_0 = arith.constant 0 : i32
    %2 = arith.cmpi ne, %1, %c0_i32_0 : i32
    scf.if %2 {
      %cst_21 = arith.constant 0.000000e+00 : f32
      %52 = vector.broadcast %cst_21 : f32 to vector<1x1xf32>
      %c0_22 = arith.constant 0 : index
      %c0_23 = arith.constant 0 : index
      %53 = vector.load %arg3[%c0_22, %c0_23] : memref<1x1xf32, #tpu.memory_space<vmem>>, vector<1x1xf32>
      tpu.vector_store %arg3[%c0_22, %c0_23], %52 {strides = array<i32>} : memref<1x1xf32, #tpu.memory_space<vmem>>, vector<1x1xf32>,
    } else {
    }
    %c0 = arith.constant 0 : index
    %c0_1 = arith.constant 0 : index
    %3 = vector.load %arg1[%c0, %c0_1] : memref<16x10xf32, #tpu.memory_space<vmem>>, vector<16x10xf32>
    %c0_2 = arith.constant 0 : index
    %c0_3 = arith.constant 0 : index
    %4 = vector.load %arg2[%c0_2, %c0_3] : memref<16x1xi32, #tpu.memory_space<vmem>>, vector<16x1xi32>
    %5 = tpu.iota {dimensions = array<i32: 0>} : vector<16x1xi32>
    %c16_i32 = arith.constant 16 : i32
    %6 = arith.muli %arg0, %c16_i32 : i32
    %7 = vector.broadcast %6 : i32 to vector<16x1xi32>
    %8 = arith.addi %5, %7 : vector<16x1xi32>
    %c16_i32_4 = arith.constant 16 : i32
    %9 = vector.broadcast %c16_i32_4 : i32 to vector<16x1xi32>
    %10 = arith.cmpi slt, %8, %9 : vector<16x1xi32>
    %cst = arith.constant 0.000000e+00 : f32
    %11 = vector.shape_cast %10 : vector<16x1xi1> to vector<16x1xi1>
    %12 = vector.broadcast %11 : vector<16x1xi1> to vector<16x10xi1>
    %13 = vector.broadcast %cst : f32 to vector<16x10xf32>
    %14 = arith.select %12, %3, %13 : vector<16x10xi1>, vector<16x10xf32>
    %cst_5 = arith.constant dense<0xFF800000> : vector<16xf32>
    %15 = vector.multi_reduction <maximumf>, %14, %cst_5 [1] : vector<16x10xf32> to vector<16xf32>
    %16 = vector.shape_cast %15 : vector<16xf32> to vector<16x1xf32>
    %17 = vector.broadcast %16 : vector<16x1xf32> to vector<16x10xf32>
    %18 = arith.subf %14, %17 : vector<16x10xf32>
    %19 = math.exp %18 : vector<16x10xf32>
    %cst_6 = arith.constant dense<0.000000e+00> : vector<16xf32>
    %20 = vector.multi_reduction <add>, %19, %cst_6 [1] : vector<16x10xf32> to vector<16xf32>
    %21 = vector.shape_cast %20 : vector<16xf32> to vector<16x1xf32>
    %22 = math.log %21 : vector<16x1xf32>
    %23 = arith.addf %16, %22 : vector<16x1xf32>
    %24 = tpu.iota {dimensions = array<i32: 1>} : vector<16x10xi32>
    %25 = vector.broadcast %4 : vector<16x1xi32> to vector<16x10xi32>
    %26 = arith.cmpi eq, %24, %25 : vector<16x10xi32>
    %cst_7 = arith.constant 0.000000e+00 : f32
    %27 = vector.broadcast %cst_7 : f32 to vector<16x10xf32>
    %28 = arith.select %26, %14, %27 : vector<16x10xi1>, vector<16x10xf32>
    %cst_8 = arith.constant dense<0.000000e+00> : vector<16xf32>
    %29 = vector.multi_reduction <add>, %28, %cst_8 [1] : vector<16x10xf32> to vector<16xf32>
    %30 = vector.shape_cast %29 : vector<16xf32> to vector<16x1xf32>
    %cst_9 = arith.constant dense<0.000000e+00> : vector<16xf32>
    %31 = vector.multi_reduction <add>, %14, %cst_9 [1] : vector<16x10xf32> to vector<16xf32>
    %32 = vector.shape_cast %31 : vector<16xf32> to vector<16x1xf32>
    %33 = arith.subf %23, %30 : vector<16x1xf32>
    %cst_10 = arith.constant 0.899999976 : f32
    %34 = vector.broadcast %cst_10 : f32 to vector<16x1xf32>
    %35 = arith.mulf %34, %33 : vector<16x1xf32>
    %cst_11 = arith.constant 1.000000e+01 : f32
    %36 = vector.broadcast %cst_11 : f32 to vector<16x1xf32>
    %37 = arith.mulf %36, %23 : vector<16x1xf32>
    %38 = arith.subf %37, %32 : vector<16x1xf32>
    %cst_12 = arith.constant 0.00999999977 : f32
    %39 = vector.broadcast %cst_12 : f32 to vector<16x1xf32>
    %40 = arith.mulf %39, %38 : vector<16x1xf32>
    %41 = arith.addf %35, %40 : vector<16x1xf32>
    %cst_13 = arith.constant 0.000000e+00 : f32
    %42 = vector.broadcast %cst_13 : f32 to vector<16x1xf32>
    %43 = arith.select %10, %41, %42 : vector<16x1xi1>, vector<16x1xf32>
    %c0_14 = arith.constant 0 : index
    %c0_15 = arith.constant 0 : index
    %44 = vector.load %arg3[%c0_14, %c0_15] : memref<1x1xf32, #tpu.memory_space<vmem>>, vector<1x1xf32>
    %cst_16 = arith.constant dense<0.000000e+00> : vector<1xf32>
    %45 = vector.multi_reduction <add>, %43, %cst_16 [0] : vector<16x1xf32> to vector<1xf32>
    %46 = vector.shape_cast %45 : vector<1xf32> to vector<1x1xf32>
    %47 = arith.addf %44, %46 : vector<1x1xf32>
    %c0_17 = arith.constant 0 : index
    %c0_18 = arith.constant 0 : index
    %48 = vector.load %arg3[%c0_17, %c0_18] : memref<1x1xf32, #tpu.memory_space<vmem>>, vector<1x1xf32>
    tpu.vector_store %arg3[%c0_17, %c0_18], %47 {strides = array<i32>} : memref<1x1xf32, #tpu.memory_space<vmem>>, vector<1x1xf32>,
    %c0_i32_19 = arith.constant 0 : i32
    %49 = arith.cmpi eq, %arg0, %c0_i32_19 : i32
    %50 = arith.extui %49 : i1 to i32
    %c0_i32_20 = arith.constant 0 : i32
    %51 = arith.cmpi ne, %50, %c0_i32_20 : i32
    scf.if %51 {
      %c0_21 = arith.constant 0 : index
      %c0_22 = arith.constant 0 : index
      %52 = vector.load %arg3[%c0_21, %c0_22] : memref<1x1xf32, #tpu.memory_space<vmem>>, vector<1x1xf32>
      %cst_23 = arith.constant 6.250000e-02 : f32
      %53 = vector.broadcast %cst_23 : f32 to vector<1x1xf32>
      %54 = arith.mulf %52, %53 : vector<1x1xf32>
      %c0_24 = arith.constant 0 : index
      %c0_25 = arith.constant 0 : index
      %55 = vector.load %arg3[%c0_24, %c0_25] : memref<1x1xf32, #tpu.memory_space<vmem>>, vector<1x1xf32>
      tpu.vector_store %arg3[%c0_24, %c0_25], %54 {strides = array<i32>} : memref<1x1xf32, #tpu.memory_space<vmem>>, vector<1x1xf32>,
    } else {
    }
    return
  }
  func.func @transform_0(%arg0: i32) -> (i32, i32) {
    %c0_i32 = arith.constant 0 : i32
    %c0_i32_0 = arith.constant 0 : i32
    return %arg0, %c0_i32 : i32, i32
  }
  func.func @transform_1(%arg0: i32) -> (i32, i32) {
    %c0_i32 = arith.constant 0 : i32
    %c0_i32_0 = arith.constant 0 : i32
    return %arg0, %c0_i32 : i32, i32
  }
  func.func @transform_2(%arg0: i32) -> (i32, i32) {
    %c0_i32 = arith.constant 0 : i32
    %c0_i32_0 = arith.constant 0 : i32
    %c0_i32_1 = arith.constant 0 : i32
    return %c0_i32, %c0_i32_0 : i32, i32
  }
}

</mosaic_0001>

<bundles_post_ra>
// kernel: tpu_custom_call.1
= control target key start
LH: loop header
LB: loop body
LE: loop exit
PB: predicated region body
PF: predicated region fallthrough
CT: control target
= control target key end

     0   :  { %vm37_vm0 = vcmask 80896   ;;  %v166_v4 = vmov 0   ;;  %s210_s0 = inlined_call_operand.vmem [shape: f32[16,10], index: 0, kind: input, shape index: {}]   ;;  %s211_s1 = inlined_call_operand.vmem [shape: s32[16,1], index: 1, kind: input, shape index: {}]   ;;  %s212_s2 = inlined_call_operand.hbm [shape: f32[1,1], index: 2, kind: output, shape index: {}]  }
   0x1   :  { %v18_v0 = vld [vmem:[%s210_s0] sm:$0xff]  ;;  %v19_v1 = vld [vmem:[%s210_s0 + $0x8] sm:$0xff]  ;;  %134 = vset.pattern.permute.xlu1 %v166_v4  ;;  %135 = vset.pattern.permute.xlu0 %v166_v4 }
   0x2   :  { %v20_v2 = vld [vmem:[%s211_s1] sm:$0xff]  ;;  %v38_v3 = vsel %vm37_vm0, %v18_v0, -inf }
   0x3   :  { %7 = vsyncpa [#allocation3], 0  ;;  %39 = vmax.xlane.f32.xlu0 %v38_v3  ;;  %65 = vperm.xlu1 %134, %v20_v2   ;;  %v41_v5 = vsel %vm37_vm0, %v19_v1, -inf  ;;  %v21_v6 = vld [vmem:[%s211_s1 + $0x8] sm:$0xff]  ;;  %v62_v13 = vlaneseq  ;;  %v80_v25 = vsel %vm37_vm0, %v18_v0, 0.0  ;;  %v83_v26 = vsel %vm37_vm0, %v19_v1, 0.0 }
   0x4   :  { %vm16_vm3 = vcmask 0   ;;  %v167_v27 = vmov 0.0   ;;  %s168_s0 = smov [#allocation2]  }
   0x5   :  { %v63_v15 = vand.u32 127, %v62_v13  ;;  %17 = vst.msk [vmem:[#allocation2] sm:$0x1] %vm16_vm3, %v167_v27  ;;  %s123_s1 = sshll.u32 %s168_s0, 4  ;;  %s124_s1 = int_to_ptr.vmem [resolvable:$true] %s123_s1 }
   0x6   :  { %s144_s17 = scalar_lea.vmem %s124_s1, 16  ;;  %s148_s18 = scalar_lea.vmem %s124_s1, 32 }
   0x7   :  { %42 = vmax.xlane.f32.xlu0 %v41_v5  ;;  %68 = vperm.xlu1 %134, %v21_v6   ;;  %p145_p0 = scmp.ne.s32.totalorder %s124_s1, %s144_s17  ;;  %p149_p1 = scmp.lt.s32.totalorder %s124_s1, %s124_s1 }
   0x8   :  { %p150_p2 = scmp.lt.s32.totalorder %s148_s18, %s144_s17 }
   0xa   :  { %p151_p3 = por %p150_p2, %p149_p1 }
   0xc   :  { %v100_v58 = vld [vmem:[#allocation2] sm:$0x1]  ;;  %p152_p4 = pnand %p151_p3, %p145_p0 }
  0x7e   :  { %v66_v14 = vpop.permute.xlu1 %65 }
  0x7f   :  { %vm70_vm1 = vcmp.eq.s32.totalorder %v63_v15, %v66_v14 }
  0x80   :  { %v72_v18 = vsel %vm70_vm1, %v18_v0, 0.0 }
  0x81   :  { %v74_v20 = vsel %vm37_vm0, %v72_v18, 0.0 }
  0x82   :  { %v69_v16 = vpop.permute.xlu1 %68 }
  0x83   :  { %vm71_vm2 = vcmp.eq.s32.totalorder %v63_v15, %v69_v16 }
  0x84   :  { %v73_v22 = vsel %vm71_vm2, %v19_v1, 0.0 }
  0x85   :  { %v77_v24 = vsel %vm37_vm0, %v73_v22, 0.0 }
  0x8c   :  { %v40_v7 = vpop.xlane.xlu0 %39 }
  0x8d   :  { %v44_v8 = vsub.f32 %v18_v0, %v40_v7 }
  0x8f   :  { %v46_v9 = vmul.f32 1.442695, %v44_v8 }
  0x90   :  { %v43_v10 = vpop.xlane.xlu0 %42 }
  0x91   :  { %136 = vpow2.f32 %v46_v9  ;;  %v45_v11 = vsub.f32 %v19_v1, %v43_v10 }
  0x93   :  { %v48_v12 = vmul.f32 1.442695, %v45_v11 }
  0x95   :  { %138 = vpow2.f32 %v48_v12 }
  0x9e   :  { %v137_v17 = vpop.eup %136 }
  0x9f   :  { %v50_v19 = vsel %vm37_vm0, %v137_v17, 0.0 }
  0xa0   :  { %51 = vadd.xlane.f32.xlu0 %v50_v19 }
  0xa2   :  { %v139_v21 = vpop.eup %138 }
  0xa3   :  { %v53_v23 = vsel %vm37_vm0, %v139_v21, 0.0 }
  0xa4   :  { %54 = vadd.xlane.f32.xlu1 %v53_v23  ;;  %75 = vadd.xlane.f32.xlu0 %v74_v20 }
  0xa8   :  { %78 = vadd.xlane.f32.xlu0 %v77_v24 }
  0xac   :  { %81 = vadd.xlane.f32.xlu0 %v80_v25 }
  0xb0   :  { %84 = vadd.xlane.f32.xlu0 %v83_v26 }
 0x129   :  { %v52_v28 = vpop.xlane.xlu0 %51 }
 0x12a   :  { %140 = vlog2.f32 %v52_v28 }
 0x12d   :  { %v55_v29 = vpop.xlane.xlu1 %54  ;;  %v76_v30 = vpop.xlane.xlu0 %75 }
 0x12e   :  { %142 = vlog2.f32 %v55_v29 }
 0x131   :  { %v79_v31 = vpop.xlane.xlu0 %78 }
 0x135   :  { %v82_v34 = vpop.xlane.xlu0 %81 }
 0x137   :  { %v141_v32 = vpop.eup %140 }
 0x138   :  { %v57_v33 = vmul.f32 0.6931472, %v141_v32 }
 0x139   :  { %v85_v41 = vpop.xlane.xlu0 %84 }
 0x13a   :  { %v60_v35 = vadd.f32 %v57_v33, %v40_v7 }
 0x13b   :  { %v143_v36 = vpop.eup %142 }
 0x13c   :  { %v59_v37 = vmul.f32 0.6931472, %v143_v36  ;;  %v90_v38 = vmul.f32 10.0, %v60_v35  ;;  %v86_v42 = vsub.f32 %v60_v35, %v76_v30 }
 0x13e   :  { %v61_v39 = vadd.f32 %v59_v37, %v43_v10  ;;  %v92_v40 = vsub.f32 %v90_v38, %v82_v34  ;;  %v88_v47 = vmul.f32 0.9, %v86_v42 }
 0x140   :  { %v87_v43 = vsub.f32 %v61_v39, %v79_v31  ;;  %v91_v44 = vmul.f32 10.0, %v61_v39  ;;  %v94_v45 = vmul.f32 0.01, %v92_v40 }
 0x142   :  { %v93_v46 = vsub.f32 %v91_v44, %v85_v41  ;;  %v89_v48 = vmul.f32 0.9, %v87_v43  ;;  %v96_v50 = vadd.f32 %v94_v45, %v88_v47 }
 0x144   :  { %v95_v49 = vmul.f32 0.01, %v93_v46 }
 0x146   :  { %v97_v51 = vadd.f32 %v95_v49, %v89_v48 }
 0x148   :  { %v101_v52 = vadd.f32 %v97_v51, %v96_v50 }
 0x14a   :  { %v102_v53 = vrot.slane %v101_v52, 4 }
 0x14c   :  { %v103_v54 = vadd.f32 %v102_v53, %v101_v52 }
 0x14e   :  { %v104_v55 = vrot.slane %v103_v54, 2 }
 0x150   :  { %v105_v56 = vadd.f32 %v104_v55, %v103_v54 }
 0x152   :  { %v106_v57 = vrot.slane %v105_v56, 1 }
 0x154   :  { %v107_v59 = vadd.f32 %v106_v57, %v105_v56 }
 0x156   :  { %v108_v60 = vadd.f32 %v107_v59, %v100_v58 }
 0x158   :  { %110 = vst.msk [vmem:[#allocation2] sm:$0x1] %vm16_vm3, %v108_v60 }
 0x15f   :  { %v114_v61 = vld [vmem:[#allocation2] sm:$0x1] }
 0x160   :  { %v115_v62 = vmul.f32 0.0625, %v114_v61 }
 0x162   :  { %116 = vst.msk [vmem:[#allocation2] sm:$0x1] %vm16_vm3, %v115_v62 }
 0x163   :  { %155 = shalt.err (!%p152_p4)
}
 0x164   :  { %126 = dma.vmem_to_hbm [thread:$0]  %s124_s1, 16, %s212_s2, [#allocation3]  }
 0x165   :  { %164 = dma.done.wait [#allocation3], 16  }
 0x166   :  { %165 = vsyncadd [#allocation3], 4294967280 }
 0x167   :  { %130 = vsyncpa [#allocation3], 1 }

</bundles_post_ra>
